<compile_context>
chip_gen: v6e
topology: v6e:2x2x1
jax: 0.10.0
libtpu: 0.0.40
codegen_flags: <defaults>
</compile_context>

<pallas_src>
import jax
import jax.numpy as jnp
from jax import lax
from jax.experimental import pallas as pl
from jax.experimental.pallas import tpu as pltpu


def gcn_kernel(x_ref, a_ref, w_ref, o_ref):
    # x_ref: (BS, N, Cin)   plain reshape of x[B,S,N,Cin]
    # a_ref: (N, N)         adjacency
    # w_ref: (Cin, Cout)    Linear weight (no bias)
    # o_ref: (BS, N, Cout)  output
    BS, N, Cout = o_ref.shape
    Cin = w_ref.shape[0]

    a = a_ref[...]
    x = x_ref[...]

    # d = (rowsum(A) + 1)^(-1/2) via EUP rsqrt; kept as a column -> no d.T relayout.
    d = lax.rsqrt(jnp.sum(a, axis=-1, keepdims=True) + 1.0)        # (N, 1)
    d3 = d.reshape(1, N, 1)                                         # bcast over batch & chans

    # Node mixing FIRST on the Cin-wide operand (L and W commute):
    #   L @ X == X - d * (A @ (d * X))      (factored; no dad / eye(N))
    a_b = jnp.broadcast_to(a, (BS, N, N))                           # shared A per (b, s)
    adx = jnp.einsum('bnk,bkc->bnc', a_b, d3 * x,
                     preferred_element_type=jnp.float32)            # (BS, N, Cin)
    h0 = x - d3 * adx                                               # (BS, N, Cin)

    # Channel Linear LAST: one small 2-D MXU matmul against W (no kron weight).
    he = jnp.dot(h0.reshape(BS * N, Cin), w_ref[...],
                 preferred_element_type=jnp.float32)                # (BS*N, Cout)

    o_ref[...] = jax.nn.sigmoid(he.reshape(BS, N, Cout)).astype(o_ref.dtype)


def my_gcn_forward(x, A, W):
    """x: [B,S,N,Cin] f32, A: [N,N] f32, W: [Cin,Cout] f32 -> (sigmoid(H), A)."""
    B, S, N, Cin = x.shape
    Cout = W.shape[1]
    BS = B * S

    # Pure layout plumbing (free reshapes, no transposes) outside the kernel.
    x3 = x.reshape(BS, N, Cin).astype(jnp.float32)
    A32 = A.astype(jnp.float32)
    W32 = W.astype(jnp.float32)

    cost = pl.CostEstimate(
        flops=2 * BS * N * N * Cin            # node mixing (batched A matmul)
              + 2 * BS * N * Cin * Cout       # channel Linear
              + 6 * BS * N * Cout,            # elementwise (scale/sub/sigmoid glue)
        transcendentals=BS * N * Cout + N,    # sigmoid exp + rsqrt
        bytes_accessed=4 * (x3.size + A32.size + W32.size + BS * N * Cout),
    )

    out3 = pl.pallas_call(
        gcn_kernel,
        out_shape=jax.ShapeDtypeStruct((BS, N, Cout), jnp.float32),
        in_specs=[pl.BlockSpec(memory_space=pltpu.MemorySpace.VMEM)] * 3,
        out_specs=pl.BlockSpec(memory_space=pltpu.MemorySpace.VMEM),
        cost_estimate=cost,
    )(x3, A32, W32)

    # [BS, N, Cout] -> [B, S, N, Cout]   (metadata-only reshape)
    return out3.reshape(B, S, N, Cout), A


def my_gcn_reference(x, A, W):
    x_emb = jnp.einsum('bsnc,cj->bsnj', x, W)
    d = (jnp.sum(A, -1) + 1.0) ** (-0.5)
    D = jnp.diag(d)
    L = jnp.eye(A.shape[0], dtype=jnp.float32) - D @ A @ D
    H = jnp.einsum('ik,bskj->bsij', L, x_emb)
    return jax.nn.sigmoid(H), A


if __name__ == "__main__":
    B, S, N = 2, 8, 16
    in_channels, out_channels = 4, 32

    key = jax.random.PRNGKey(0)
    kx, ka, kw = jax.random.split(key, 3)

    x = jax.random.normal(kx, (B, S, N, in_channels), dtype=jnp.float32)
    A = jax.random.uniform(ka, (N, N), dtype=jnp.float32)              # adjacency-like
    # "nn.Linear(in, out, bias=False)" weight, stored as [Cin, Cout]
    W = (jax.random.normal(kw, (in_channels, out_channels), dtype=jnp.float32)
         * (1.0 / jnp.sqrt(in_channels)))

    out, A_out = my_gcn_forward(x, A, W)
    out = jax.block_until_ready(out)

    ref, _ = my_gcn_reference(x, A, W)
    assert out.shape == (B, S, N, out_channels)
    assert jnp.allclose(out, ref, atol=1e-5, rtol=1e-5), "mismatch vs reference"
    assert jnp.array_equal(A_out, A)

    print("KERNEL_OK")
</pallas_src>

<mosaic_0001>
module attributes {stable_mosaic.version = 11 : i64} {
  func.func @gcn_kernel(%arg0: memref<16x16x4xf32, #tpu.memory_space<vmem>>, %arg1: memref<16x16xf32, #tpu.memory_space<vmem>>, %arg2: memref<4x32xf32, #tpu.memory_space<vmem>>, %arg3: memref<16x16x32xf32, #tpu.memory_space<vmem>>) attributes {dimension_semantics = [], scalar_prefetch = 0 : i64, scratch_operands = 0 : i64, tpu.core_type = #tpu.core_type<tc>} {
    %c0 = arith.constant 0 : index
    %c0_0 = arith.constant 0 : index
    %0 = vector.load %arg1[%c0, %c0_0] : memref<16x16xf32, #tpu.memory_space<vmem>>, vector<16x16xf32>
    %c0_1 = arith.constant 0 : index
    %c0_2 = arith.constant 0 : index
    %c0_3 = arith.constant 0 : index
    %1 = vector.load %arg0[%c0_1, %c0_2, %c0_3] : memref<16x16x4xf32, #tpu.memory_space<vmem>>, vector<16x16x4xf32>
    %cst = arith.constant dense<0.000000e+00> : vector<16xf32>
    %2 = vector.multi_reduction <add>, %0, %cst [1] : vector<16x16xf32> to vector<16xf32>
    %3 = vector.shape_cast %2 : vector<16xf32> to vector<16x1xf32>
    %cst_4 = arith.constant 1.000000e+00 : f32
    %4 = vector.broadcast %cst_4 : f32 to vector<16x1xf32>
    %5 = arith.addf %3, %4 : vector<16x1xf32>
    %6 = math.rsqrt %5 : vector<16x1xf32>
    %7 = vector.shape_cast %6 : vector<16x1xf32> to vector<1x16x1xf32>
    %8 = vector.shape_cast %0 : vector<16x16xf32> to vector<1x16x16xf32>
    %9 = vector.broadcast %8 : vector<1x16x16xf32> to vector<16x16x16xf32>
    %10 = vector.broadcast %7 : vector<1x16x1xf32> to vector<16x16x4xf32>
    %11 = arith.mulf %10, %1 : vector<16x16x4xf32>
    "tpu.trace_start"() <{level = 10 : i32, message = "bnk,bkc->bnc"}> : () -> ()
    %cst_5 = arith.constant dense<0.000000e+00> : vector<16x16x4xf32>
    %12 = tpu.matmul %9, %11, %cst_5 {dimension_numbers = #tpu.dot_dimension_numbers<[2], [1], [1], [2], [0, 0, 0, 1, 1, 2], [0], [0]>} : vector<16x16x16xf32>, vector<16x16x4xf32>, vector<16x16x4xf32> -> vector<16x16x4xf32>
    "tpu.trace_stop"() : () -> ()
    %13 = vector.broadcast %7 : vector<1x16x1xf32> to vector<16x16x4xf32>
    %14 = arith.mulf %13, %12 : vector<16x16x4xf32>
    %15 = arith.subf %1, %14 : vector<16x16x4xf32>
    %16 = vector.shape_cast %15 : vector<16x16x4xf32> to vector<256x4xf32>
    %c0_6 = arith.constant 0 : index
    %c0_7 = arith.constant 0 : index
    %17 = vector.load %arg2[%c0_6, %c0_7] : memref<4x32xf32, #tpu.memory_space<vmem>>, vector<4x32xf32>
    %cst_8 = arith.constant dense<0.000000e+00> : vector<256x32xf32>
    %18 = tpu.matmul %16, %17, %cst_8 {dimension_numbers = #tpu.dot_dimension_numbers<[1], [0], [0], [1], [0, 0, 1, 1], [], []>} : vector<256x4xf32>, vector<4x32xf32>, vector<256x32xf32> -> vector<256x32xf32>
    %19 = vector.shape_cast %18 : vector<256x32xf32> to vector<16x16x32xf32>
    %20 = arith.negf %19 : vector<16x16x32xf32>
    %21 = math.exp %20 : vector<16x16x32xf32>
    %cst_9 = arith.constant 1.000000e+00 : f32
    %22 = vector.broadcast %cst_9 : f32 to vector<16x16x32xf32>
    %23 = arith.addf %22, %21 : vector<16x16x32xf32>
    %24 = arith.divf %22, %23 : vector<16x16x32xf32>
    %c0_10 = arith.constant 0 : index
    %c0_11 = arith.constant 0 : index
    %c0_12 = arith.constant 0 : index
    %25 = vector.load %arg3[%c0_10, %c0_11, %c0_12] : memref<16x16x32xf32, #tpu.memory_space<vmem>>, vector<16x16x32xf32>
    tpu.vector_store %arg3[%c0_10, %c0_11, %c0_12], %24 {strides = array<i32>} : memref<16x16x32xf32, #tpu.memory_space<vmem>>, vector<16x16x32xf32>,
    return
  }
}

</mosaic_0001>

<bundles_post_ra>
// kernel: tpu_custom_call.1
= control target key start
LH: loop header
LB: loop body
LE: loop exit
PB: predicated region body
PF: predicated region fallthrough
CT: control target
= control target key end

     0   :  { %vm49_vm0 = vcmask 130048   ;;  %s2908_s0 = inlined_call_operand.vmem [shape: f32[16,16,4], index: 0, kind: input, shape index: {}]   ;;  %s2909_s1 = inlined_call_operand.vmem [shape: f32[16,16], index: 1, kind: input, shape index: {}]   ;;  %s2910_s2 = inlined_call_operand.vmem [shape: f32[4,32], index: 2, kind: input, shape index: {}]   ;;  %s2911_s3 = inlined_call_operand.hbm [shape: f32[16,16,32], index: 3, kind: output, shape index: {}]  }
   0x1   :  { %v2471_v0 = vld [vmem:[%s2909_s1 + $0x8] sm:$0xff]  ;;  %v2476_v1 = vld [vmem:[%s2909_s1] sm:$0xff] }
   0x2   :  { %8 = vsyncpa [#allocation3], 0  ;;  %v53_v2 = vsel %vm49_vm0, %v2471_v0, 0.0  ;;  %2128 = vmatprep.mubr.msk.f32.mxu0 %vm49_vm0, %v2476_v1  ;;  %2135 = vmatprep.mubr.msk.f32.mxu1 %vm49_vm0, %v2476_v1  ;;  %v50_v3 = vsel %vm49_vm0, %v2476_v1, 0.0  ;;  %v2489_v8 = vld [vmem:[%s2908_s0 + $0x8] sm:$0xff]  ;;  %v2494_v9 = vld [vmem:[%s2908_s0 + $0x18] sm:$0xff] }
   0x3   :  { %54 = vadd.xlane.f32.xlu0 %v53_v2  ;;  %v2505_v13 = vld [vmem:[%s2908_s0] sm:$0xff]  ;;  %v2510_v14 = vld [vmem:[%s2908_s0 + $0x10] sm:$0xff]  ;;  %v2521_v18 = vld [vmem:[%s2908_s0 + $0x28] sm:$0xff]  ;;  %vm1460_vm1 = vcmask 1043456   ;;  %vm1363_vm2 = vcmask 31744   ;;  %vm1881_vm3 = vcmask 261120  }
   0x4   :  { %v2526_v19 = vld [vmem:[%s2908_s0 + $0x38] sm:$0xff]  ;;  %v2531_v20 = vld [vmem:[%s2908_s0 + $0x20] sm:$0xff]  ;;  %v2536_v21 = vld [vmem:[%s2908_s0 + $0x30] sm:$0xff] }
   0x5   :  { %v2553_v26 = vld [vmem:[%s2908_s0 + $0x48] sm:$0xff]  ;;  %v2558_v27 = vld [vmem:[%s2908_s0 + $0x58] sm:$0xff]  ;;  %v2565_v28 = vld [vmem:[%s2908_s0 + $0x40] sm:$0xff] }
   0x6   :  { %v2570_v29 = vld [vmem:[%s2908_s0 + $0x50] sm:$0xff]  ;;  %v2589_v34 = vld [vmem:[%s2908_s0 + $0x68] sm:$0xff]  ;;  %v2594_v35 = vld [vmem:[%s2908_s0 + $0x78] sm:$0xff] }
   0x7   :  { %51 = vadd.xlane.f32.xlu0 %v50_v3  ;;  %v2601_v36 = vld [vmem:[%s2908_s0 + $0x60] sm:$0xff]  ;;  %v2606_v37 = vld [vmem:[%s2908_s0 + $0x70] sm:$0xff]  ;;  %v2625_v42 = vld [vmem:[%s2908_s0 + $0x88] sm:$0xff] }
   0x8   :  { %v2630_v43 = vld [vmem:[%s2908_s0 + $0x98] sm:$0xff]  ;;  %v2637_v44 = vld [vmem:[%s2908_s0 + $0x80] sm:$0xff]  ;;  %v2642_v45 = vld [vmem:[%s2908_s0 + $0x90] sm:$0xff] }
   0x9   :  { %v2661_v50 = vld [vmem:[%s2908_s0 + $0xa8] sm:$0xff]  ;;  %v2666_v51 = vld [vmem:[%s2908_s0 + $0xb8] sm:$0xff]  ;;  %v2673_v52 = vld [vmem:[%s2908_s0 + $0xa0] sm:$0xff] }
   0xa   :  { %v2678_v53 = vld [vmem:[%s2908_s0 + $0xb0] sm:$0xff]  ;;  %v2697_v58 = vld [vmem:[%s2908_s0 + $0xc8] sm:$0xff]  ;;  %v2702_v59 = vld [vmem:[%s2908_s0 + $0xd8] sm:$0xff] }
   0xb   :  { %v2709_v60 = vld [vmem:[%s2908_s0 + $0xc0] sm:$0xff]  ;;  %v2714_v61 = vld [vmem:[%s2908_s0 + $0xd0] sm:$0xff] }
  0x8c   :  { %v55_v4 = vpop.xlane.xlu0 %54 }
  0x8d   :  { %v57_v5 = vadd.f32 1.0, %v55_v4  ;;  %v2733_v4 = vld [vmem:[%s2908_s0 + $0xe8] sm:$0xff] }
  0x8f   :  { %2291 = vrsqrt.f32 %v57_v5  ;;  %v2738_v5 = vld [vmem:[%s2908_s0 + $0xf8] sm:$0xff] }
  0x90   :  { %v52_v6 = vpop.xlane.xlu0 %51 }
  0x91   :  { %v56_v7 = vadd.f32 1.0, %v52_v6  ;;  %v2745_v6 = vld [vmem:[%s2908_s0 + $0xe0] sm:$0xff] }
  0x93   :  { %2293 = vrsqrt.f32 %v56_v7  ;;  %v2750_v7 = vld [vmem:[%s2908_s0 + $0xf0] sm:$0xff] }
  0x9c   :  { %v2496_v10 = vpop.eup %2291 }
  0x9d   :  { %v61_v11 = vmul.f32 %v2496_v10, %v2489_v8  ;;  %v63_v12 = vmul.f32 %v2496_v10, %v2494_v9  ;;  %v65_v22 = vmul.f32 %v2496_v10, %v2521_v18  ;;  %v67_v23 = vmul.f32 %v2496_v10, %v2526_v19 }
  0x9e   :  { %v69_v30 = vmul.f32 %v2496_v10, %v2553_v26  ;;  %v71_v31 = vmul.f32 %v2496_v10, %v2558_v27  ;;  %v73_v38 = vmul.f32 %v2496_v10, %v2589_v34  ;;  %v75_v39 = vmul.f32 %v2496_v10, %v2594_v35 }
  0x9f   :  { %2124 = vmatprep.subr.mxu0 %v61_v11  ;;  %2131 = vmatprep.subr.mxu1 %v63_v12  ;;  %v77_v46 = vmul.f32 %v2496_v10, %v2625_v42  ;;  %v79_v47 = vmul.f32 %v2496_v10, %v2630_v43  ;;  %v81_v54 = vmul.f32 %v2496_v10, %v2661_v50 }
  0xa0   :  { %v2512_v15 = vpop.eup %2293  ;;  %2125 = vmatpush3.msra.mxu0 %v61_v11  ;;  %2132 = vmatpush3.msra.mxu1 %v63_v12  ;;  %v83_v55 = vmul.f32 %v2496_v10, %v2666_v51  ;;  %v85_v62 = vmul.f32 %v2496_v10, %v2697_v58  ;;  %v87_v63 = vmul.f32 %v2496_v10, %v2702_v59 }
  0xa1   :  { %v60_v16 = vmul.f32 %v2512_v15, %v2505_v13  ;;  %v62_v17 = vmul.f32 %v2512_v15, %v2510_v14  ;;  %v64_v24 = vmul.f32 %v2512_v15, %v2531_v20  ;;  %v66_v25 = vmul.f32 %v2512_v15, %v2536_v21 }
  0xa2   :  { %v68_v32 = vmul.f32 %v2512_v15, %v2565_v28  ;;  %v70_v33 = vmul.f32 %v2512_v15, %v2570_v29  ;;  %v72_v40 = vmul.f32 %v2512_v15, %v2601_v36  ;;  %v74_v41 = vmul.f32 %v2512_v15, %v2606_v37 }
  0xa3   :  { %2126 = vmatprep.subr.mxu0 %v60_v16  ;;  %2133 = vmatprep.subr.mxu1 %v62_v17  ;;  %v76_v48 = vmul.f32 %v2512_v15, %v2637_v44  ;;  %v78_v49 = vmul.f32 %v2512_v15, %v2642_v45  ;;  %v80_v56 = vmul.f32 %v2512_v15, %v2673_v52 }
  0xa4   :  { %2127 = vmatpush3.msra.mxu0 %v60_v16  ;;  %2134 = vmatpush3.msra.mxu1 %v62_v17  ;;  %v82_v57 = vmul.f32 %v2512_v15, %v2678_v53  ;;  %v84_v2 = vmul.f32 %v2512_v15, %v2709_v60  ;;  %v86_v3 = vmul.f32 %v2512_v15, %v2714_v61 }
  0xa5   :  { %2129 = vmatmul.mubr.msk.f32.vlgmr.msra.gmra.mxu0 %vm49_vm0, %v2471_v0  ;;  %2136 = vmatmul.mubr.msk.f32.vlgmr.msra.gmra.mxu1 %vm49_vm0, %v2471_v0  ;;  %v89_v11 = vmul.f32 %v2496_v10, %v2733_v4  ;;  %v91_v12 = vmul.f32 %v2496_v10, %v2738_v5  ;;  %v88_v16 = vmul.f32 %v2512_v15, %v2745_v6 }
  0xa6   :  { %2138 = vmatprep.subr.mxu0 %v65_v22  ;;  %2145 = vmatprep.subr.mxu1 %v67_v23  ;;  %v90_v17 = vmul.f32 %v2512_v15, %v2750_v7 }
  0xa7   :  { %2139 = vmatpush3.msra.mxu0 %v65_v22  ;;  %2146 = vmatpush3.msra.mxu1 %v67_v23  ;;  %v1362_v22 = vld [vmem:[%s2910_s2] sm:$0xf]  ;;  %s2445_s2 = smov [#allocation2]  }
  0xa8   :  { %2140 = vmatprep.subr.mxu0 %v64_v24  ;;  %2147 = vmatprep.subr.mxu1 %v66_v25  ;;  %s1919_s24 = sshll.u32 %s2445_s2, 4  ;;  %s1920_s24 = int_to_ptr.vmem [resolvable:$true] %s1919_s24 }
  0xa9   :  { %2141 = vmatpush3.msra.mxu0 %v64_v24  ;;  %2142 = vmatprep.mubr.msk.f32.mxu0 %vm49_vm0, %v2476_v1  ;;  %s2423_s25 = scalar_lea.vmem %s1920_s24, 4096  ;;  %p2428_p1 = scmp.lt.s32.totalorder %s1920_s24, %s1920_s24 }
  0xaa   :  { %2148 = vmatpush3.msra.mxu1 %v66_v25  ;;  %2149 = vmatprep.mubr.msk.f32.mxu1 %vm49_vm0, %v2476_v1  ;;  %p2424_p0 = scmp.ne.s32.totalorder %s1920_s24, %s2423_s25  ;;  %p2429_p2 = scmp.lt.s32.totalorder %s2423_s25, %s2423_s25 }
  0xab   :  { %2143 = vmatmul.mubr.msk.f32.vlgmr.msra.gmra.mxu0 %vm49_vm0, %v2471_v0  ;;  %2150 = vmatmul.mubr.msk.f32.vlgmr.msra.gmra.mxu1 %vm49_vm0, %v2471_v0 }
  0xac   :  { %2152 = vmatprep.subr.mxu0 %v69_v30  ;;  %2159 = vmatprep.subr.mxu1 %v71_v31  ;;  %p2430_p3 = por %p2429_p2, %p2428_p1 }
  0xad   :  { %2153 = vmatpush3.msra.mxu0 %v69_v30  ;;  %2160 = vmatpush3.msra.mxu1 %v71_v31 }
  0xae   :  { %2154 = vmatprep.subr.mxu0 %v68_v32  ;;  %2161 = vmatprep.subr.mxu1 %v70_v33  ;;  %p2431_p4 = pnand %p2430_p3, %p2424_p0 }
  0xaf   :  { %2155 = vmatpush3.msra.mxu0 %v68_v32  ;;  %2156 = vmatprep.mubr.msk.f32.mxu0 %vm49_vm0, %v2476_v1 }
  0xb0   :  { %2162 = vmatpush3.msra.mxu1 %v70_v33  ;;  %2163 = vmatprep.mubr.msk.f32.mxu1 %vm49_vm0, %v2476_v1 }
  0xb1   :  { %2157 = vmatmul.mubr.msk.f32.vlgmr.msra.gmra.mxu0 %vm49_vm0, %v2471_v0  ;;  %2164 = vmatmul.mubr.msk.f32.vlgmr.msra.gmra.mxu1 %vm49_vm0, %v2471_v0 }
  0xb2   :  { %2166 = vmatprep.subr.mxu0 %v73_v38  ;;  %2173 = vmatprep.subr.mxu1 %v75_v39 }
  0xb3   :  { %2167 = vmatpush3.msra.mxu0 %v73_v38  ;;  %2174 = vmatpush3.msra.mxu1 %v75_v39 }
  0xb4   :  { %2168 = vmatprep.subr.mxu0 %v72_v40  ;;  %2175 = vmatprep.subr.mxu1 %v74_v41 }
  0xb5   :  { %2169 = vmatpush3.msra.mxu0 %v72_v40  ;;  %2170 = vmatprep.mubr.msk.f32.mxu0 %vm49_vm0, %v2476_v1 }
  0xb6   :  { %2176 = vmatpush3.msra.mxu1 %v74_v41  ;;  %2177 = vmatprep.mubr.msk.f32.mxu1 %vm49_vm0, %v2476_v1 }
  0xb7   :  { %2171 = vmatmul.mubr.msk.f32.vlgmr.msra.gmra.mxu0 %vm49_vm0, %v2471_v0  ;;  %2178 = vmatmul.mubr.msk.f32.vlgmr.msra.gmra.mxu1 %vm49_vm0, %v2471_v0 }
  0xb8   :  { %2180 = vmatprep.subr.mxu0 %v77_v46  ;;  %2187 = vmatprep.subr.mxu1 %v79_v47 }
  0xb9   :  { %2181 = vmatpush3.msra.mxu0 %v77_v46  ;;  %2188 = vmatpush3.msra.mxu1 %v79_v47 }
  0xba   :  { %2182 = vmatprep.subr.mxu0 %v76_v48  ;;  %2189 = vmatprep.subr.mxu1 %v78_v49 }
  0xbb   :  { %2183 = vmatpush3.msra.mxu0 %v76_v48  ;;  %2184 = vmatprep.mubr.msk.f32.mxu0 %vm49_vm0, %v2476_v1 }
  0xbc   :  { %2190 = vmatpush3.msra.mxu1 %v78_v49  ;;  %2191 = vmatprep.mubr.msk.f32.mxu1 %vm49_vm0, %v2476_v1 }
  0xbd   :  { %2185 = vmatmul.mubr.msk.f32.vlgmr.msra.gmra.mxu0 %vm49_vm0, %v2471_v0  ;;  %2192 = vmatmul.mubr.msk.f32.vlgmr.msra.gmra.mxu1 %vm49_vm0, %v2471_v0 }
  0xbe   :  { %2194 = vmatprep.subr.mxu0 %v81_v54  ;;  %2201 = vmatprep.subr.mxu1 %v83_v55 }
  0xbf   :  { %2195 = vmatpush3.msra.mxu0 %v81_v54  ;;  %2202 = vmatpush3.msra.mxu1 %v83_v55 }
  0xc0   :  { %2196 = vmatprep.subr.mxu0 %v80_v56  ;;  %2203 = vmatprep.subr.mxu1 %v82_v57 }
  0xc1   :  { %2197 = vmatpush3.msra.mxu0 %v80_v56  ;;  %2198 = vmatprep.mubr.msk.f32.mxu0 %vm49_vm0, %v2476_v1 }
  0xc2   :  { %2204 = vmatpush3.msra.mxu1 %v82_v57  ;;  %2205 = vmatprep.mubr.msk.f32.mxu1 %vm49_vm0, %v2476_v1 }
  0xc3   :  { %2199 = vmatmul.mubr.msk.f32.vlgmr.msra.gmra.mxu0 %vm49_vm0, %v2471_v0  ;;  %2206 = vmatmul.mubr.msk.f32.vlgmr.msra.gmra.mxu1 %vm49_vm0, %v2471_v0 }
  0xc4   :  { %2208 = vmatprep.subr.mxu0 %v85_v62  ;;  %2215 = vmatprep.subr.mxu1 %v87_v63 }
  0xc5   :  { %2209 = vmatpush3.msra.mxu0 %v85_v62  ;;  %2216 = vmatpush3.msra.mxu1 %v87_v63 }
  0xc6   :  { %2210 = vmatprep.subr.mxu0 %v84_v2  ;;  %2217 = vmatprep.subr.mxu1 %v86_v3 }
  0xc7   :  { %2211 = vmatpush3.msra.mxu0 %v84_v2  ;;  %2212 = vmatprep.mubr.msk.f32.mxu0 %vm49_vm0, %v2476_v1 }
  0xc8   :  { %2218 = vmatpush3.msra.mxu1 %v86_v3  ;;  %2219 = vmatprep.mubr.msk.f32.mxu1 %vm49_vm0, %v2476_v1 }
  0xc9   :  { %2213 = vmatmul.mubr.msk.f32.vlgmr.msra.gmra.mxu0 %vm49_vm0, %v2471_v0  ;;  %2220 = vmatmul.mubr.msk.f32.vlgmr.msra.gmra.mxu1 %vm49_vm0, %v2471_v0 }
  0xca   :  { %2222 = vmatprep.subr.mxu0 %v89_v11  ;;  %2229 = vmatprep.subr.mxu1 %v91_v12 }
  0xcb   :  { %2223 = vmatpush3.msra.mxu0 %v89_v11  ;;  %2230 = vmatpush3.msra.mxu1 %v91_v12 }
  0xcc   :  { %2224 = vmatprep.subr.mxu0 %v88_v16  ;;  %2231 = vmatprep.subr.mxu1 %v90_v17 }
  0xcd   :  { %2225 = vmatpush3.msra.mxu0 %v88_v16  ;;  %2226 = vmatprep.mubr.msk.f32.mxu0 %vm49_vm0, %v2476_v1 }
  0xce   :  { %2232 = vmatpush3.msra.mxu1 %v90_v17  ;;  %2233 = vmatprep.mubr.msk.f32.mxu1 %vm49_vm0, %v2476_v1 }
  0xcf   :  { %2227 = vmatmul.mubr.msk.f32.vlgmr.msra.gmra.mxu0 %vm49_vm0, %v2471_v0  ;;  %2234 = vmatmul.mubr.msk.f32.vlgmr.msra.gmra.mxu1 %vm49_vm0, %v2471_v0 }
  0xd0   :  { %2236 = vmatprep.subr.msk.mxu0 %vm1460_vm1, %v1362_v22  ;;  %2286 = vmatprep.subr.msk.mxu1 %vm1460_vm1, %v1362_v22 }
  0xd1   :  { %2237 = vmatpush3.msk.msra.mxu0 %vm1460_vm1, %v1362_v22  ;;  %2287 = vmatpush3.msk.msra.mxu1 %vm1460_vm1, %v1362_v22 }
 0x165   :  { %v2130_v23 = vpop.f32.mrf.mxu0  ;;  %v2137_v24 = vpop.f32.mrf.mxu1 }
 0x166   :  { %v1299_v25 = vmul.f32 %v2496_v10, %v2130_v23  ;;  %v1301_v38 = vmul.f32 %v2496_v10, %v2137_v24 }
 0x167   :  { %v164_v1 = vpop.f32.mrf.mxu0  ;;  %v239_v30 = vpop.f32.mrf.mxu1 }
 0x168   :  { %v1298_v31 = vmul.f32 %v2512_v15, %v164_v1  ;;  %v1300_v32 = vmul.f32 %v2512_v15, %v239_v30  ;;  %v1331_v33 = vsub.f32 %v2489_v8, %v1299_v25 }
 0x16a   :  { %v1330_v0 = vsub.f32 %v2505_v13, %v1298_v31  ;;  %v1332_v41 = vsub.f32 %v2510_v14, %v1300_v32  ;;  %v1333_v13 = vsub.f32 %v2494_v9, %v1301_v38 }
 0x16b   :  { %v2144_v39 = vpop.f32.mrf.mxu0  ;;  %v2151_v40 = vpop.f32.mrf.mxu1 }
 0x16c   :  { %2238 = vmatprep.mubr.msk.f32.mxu0 %vm1363_vm2, %v1330_v0  ;;  %v1303_v8 = vmul.f32 %v2496_v10, %v2144_v39  ;;  %v1305_v57 = vmul.f32 %v2496_v10, %v2151_v40 }
 0x16d   :  { %v314_v46 = vpop.f32.mrf.mxu0  ;;  %v389_v47 = vpop.f32.mrf.mxu1  ;;  %2239 = vmatmul.mubr.msk.f32.vlgmr.msra.gmra.mxu0 %vm1363_vm2, %v1331_v33 }
 0x16e   :  { %v1302_v48 = vmul.f32 %v2512_v15, %v314_v46  ;;  %2241 = vmatprep.mubr.msk.f32.mxu0 %vm1363_vm2, %v1332_v41  ;;  %v1304_v54 = vmul.f32 %v2512_v15, %v389_v47  ;;  %v1335_v56 = vsub.f32 %v2521_v18, %v1303_v8 }
 0x170   :  { %v1334_v49 = vsub.f32 %v2531_v20, %v1302_v48  ;;  %v1336_v9 = vsub.f32 %v2536_v21, %v1304_v54  ;;  %v1337_v20 = vsub.f32 %v2526_v19, %v1305_v57 }
 0x171   :  { %v2158_v55 = vpop.f32.mrf.mxu0  ;;  %v2165_v14 = vpop.f32.mrf.mxu1  ;;  %2242 = vmatmul.mubr.msk.f32.gmra.mxu0 %vm1363_vm2, %v1333_v13 }
 0x172   :  { %2244 = vmatprep.mubr.msk.f32.mxu0 %vm1363_vm2, %v1334_v49  ;;  %v1307_v3 = vmul.f32 %v2496_v10, %v2158_v55  ;;  %v1309_v23 = vmul.f32 %v2496_v10, %v2165_v14 }
 0x173   :  { %v464_v62 = vpop.f32.mrf.mxu0  ;;  %v539_v63 = vpop.f32.mrf.mxu1 }
 0x174   :  { %v1306_v2 = vmul.f32 %v2512_v15, %v464_v62  ;;  %v1308_v16 = vmul.f32 %v2512_v15, %v539_v63  ;;  %v1339_v21 = vsub.f32 %v2553_v26, %v1307_v3 }
 0x175   :  { %2245 = vmatmul.mubr.msk.f32.gmra.mxu0 %vm1363_vm2, %v1335_v56 }
 0x176   :  { %2247 = vmatprep.mubr.msk.f32.mxu0 %vm1363_vm2, %v1336_v9  ;;  %v1338_v18 = vsub.f32 %v2565_v28, %v1306_v2  ;;  %v1340_v19 = vsub.f32 %v2570_v29, %v1308_v16  ;;  %v1341_v28 = vsub.f32 %v2558_v27, %v1309_v23 }
 0x177   :  { %v2172_v11 = vpop.f32.mrf.mxu0  ;;  %v2179_v12 = vpop.f32.mrf.mxu1 }
 0x178   :  { %v1311_v30 = vmul.f32 %v2496_v10, %v2172_v11  ;;  %v1313_v40 = vmul.f32 %v2496_v10, %v2179_v12 }
 0x179   :  { %v614_v17 = vpop.f32.mrf.mxu0  ;;  %v689_v22 = vpop.f32.mrf.mxu1  ;;  %2248 = vmatmul.mubr.msk.f32.gmra.mxu0 %vm1363_vm2, %v1337_v20 }
 0x17a   :  { %2250 = vmatprep.mubr.msk.f32.mxu0 %vm1363_vm2, %v1338_v18  ;;  %v1310_v24 = vmul.f32 %v2512_v15, %v614_v17  ;;  %v1312_v38 = vmul.f32 %v2512_v15, %v689_v22  ;;  %v1343_v27 = vsub.f32 %v2589_v34, %v1311_v30 }
 0x17c   :  { %v1342_v0 = vsub.f32 %v2601_v36, %v1310_v24  ;;  %v1344_v13 = vsub.f32 %v2606_v37, %v1312_v38 }
 0x17d   :  { %v2186_v25 = vpop.f32.mrf.mxu0  ;;  %v2193_v1 = vpop.f32.mrf.mxu1  ;;  %2251 = vmatmul.mubr.msk.f32.gmra.mxu0 %vm1363_vm2, %v1339_v21 }
 0x17e   :  { %2253 = vmatprep.mubr.msk.f32.mxu0 %vm1363_vm2, %v1340_v19  ;;  %v1315_v31 = vmul.f32 %v2496_v10, %v2186_v25  ;;  %v1317_v36 = vmul.f32 %v2496_v10, %v2193_v1 }
 0x17f   :  { %v764_v32 = vpop.f32.mrf.mxu0  ;;  %v839_v26 = vpop.f32.mrf.mxu1 }
 0x180   :  { %v1314_v29 = vmul.f32 %v2512_v15, %v764_v32  ;;  %v1316_v33 = vmul.f32 %v2512_v15, %v839_v26  ;;  %v1347_v41 = vsub.f32 %v2625_v42, %v1315_v31  ;;  %v1345_v42 = vsub.f32 %v2594_v35, %v1313_v40 }
 0x181   :  { %2254 = vmatmul.mubr.msk.f32.gmra.mxu0 %vm1363_vm2, %v1341_v28  ;;  %v1349_v49 = vsub.f32 %v2630_v43, %v1317_v36 }
 0x182   :  { %v1346_v39 = vsub.f32 %v2637_v44, %v1314_v29  ;;  %2256 = vmatprep.mubr.msk.f32.mxu0 %vm1363_vm2, %v1342_v0  ;;  %v1348_v48 = vsub.f32 %v2642_v45, %v1316_v33 }
 0x183   :  { %v2200_v46 = vpop.f32.mrf.mxu0  ;;  %v2207_v47 = vpop.f32.mrf.mxu1 }
 0x184   :  { %2262 = vmatprep.mubr.msk.f32.mxu1 %vm1363_vm2, %v1346_v39  ;;  %v1319_v45 = vmul.f32 %v2496_v10, %v2200_v46  ;;  %v1321_v43 = vmul.f32 %v2496_v10, %v2207_v47 }
 0x185   :  { %v914_v8 = vpop.f32.mrf.mxu0  ;;  %v989_v44 = vpop.f32.mrf.mxu1  ;;  %2263 = vmatmul.mubr.msk.f32.vlgmr.msra.gmra.mxu1 %vm1363_vm2, %v1347_v41  ;;  %2257 = vmatmul.mubr.msk.f32.gmra.mxu0 %vm1363_vm2, %v1343_v27 }
 0x186   :  { %v1318_v34 = vmul.f32 %v2512_v15, %v914_v8  ;;  %2265 = vmatprep.mubr.msk.f32.mxu1 %vm1363_vm2, %v1348_v48  ;;  %2259 = vmatprep.mubr.msk.f32.mxu0 %vm1363_vm2, %v1344_v13  ;;  %v1320_v54 = vmul.f32 %v2512_v15, %v989_v44  ;;  %v1351_v35 = vsub.f32 %v2661_v50, %v1319_v45 }
 0x187   :  { %v1353_v63 = vsub.f32 %v2666_v51, %v1321_v43 }
 0x188   :  { %v1350_v37 = vsub.f32 %v2673_v52, %v1318_v34  ;;  %v1352_v57 = vsub.f32 %v2678_v53, %v1320_v54 }
 0x189   :  { %v2214_v55 = vpop.f32.mrf.mxu0  ;;  %v2221_v14 = vpop.f32.mrf.mxu1  ;;  %2266 = vmatmul.mubr.msk.f32.gmra.mxu1 %vm1363_vm2, %v1349_v49  ;;  %2260 = vmatmul.mubr.msk.f32.gmra.mxu0 %vm1363_vm2, %v1345_v42 }
 0x18a   :  { %2268 = vmatprep.mubr.msk.f32.mxu1 %vm1363_vm2, %v1350_v37  ;;  %v1323_v9 = vmul.f32 %v2496_v10, %v2214_v55  ;;  %v1325_v12 = vmul.f32 %v2496_v10, %v2221_v14 }
 0x18b   :  { %v1064_v56 = vpop.f32.mrf.mxu0  ;;  %v1139_v52 = vpop.f32.mrf.mxu1 }
 0x18c   :  { %v1322_v62 = vmul.f32 %v2512_v15, %v1064_v56  ;;  %v1324_v50 = vmul.f32 %v2512_v15, %v1139_v52  ;;  %v1355_v53 = vsub.f32 %v2697_v58, %v1323_v9 }
 0x18d   :  { %2269 = vmatmul.mubr.msk.f32.gmra.mxu1 %vm1363_vm2, %v1351_v35 }
 0x18e   :  { %2271 = vmatprep.mubr.msk.f32.mxu1 %vm1363_vm2, %v1352_v57  ;;  %v1354_v20 = vsub.f32 %v2709_v60, %v1322_v62  ;;  %v1356_v18 = vsub.f32 %v2714_v61, %v1324_v50  ;;  %v1357_v60 = vsub.f32 %v2702_v59, %v1325_v12 }
 0x18f   :  { %v2228_v2 = vpop.f32.mrf.mxu0  ;;  %v2235_v3 = vpop.f32.mrf.mxu1 }
 0x190   :  { %v1327_v17 = vmul.f32 %v2496_v10, %v2228_v2  ;;  %v1329_v61 = vmul.f32 %v2496_v10, %v2235_v3 }
 0x191   :  { %v1214_v11 = vpop.f32.mrf.mxu0  ;;  %2272 = vmatmul.mubr.msk.f32.gmra.mxu1 %vm1363_vm2, %v1353_v63  ;;  %v1289_v16 = vpop.f32.mrf.mxu1 }
 0x192   :  { %2274 = vmatprep.mubr.msk.f32.mxu1 %vm1363_vm2, %v1354_v20  ;;  %v1326_v51 = vmul.f32 %v2512_v15, %v1214_v11  ;;  %v1328_v21 = vmul.f32 %v2512_v15, %v1289_v16  ;;  %v1359_v58 = vsub.f32 %v2733_v4, %v1327_v17  ;;  %v1361_v59 = vsub.f32 %v2738_v5, %v1329_v61 }
 0x194   :  { %v1358_v22 = vsub.f32 %v2745_v6, %v1326_v51  ;;  %v1360_v23 = vsub.f32 %v2750_v7, %v1328_v21 }
 0x195   :  { %2275 = vmatmul.mubr.msk.f32.gmra.mxu1 %vm1363_vm2, %v1355_v53 }
 0x196   :  { %2277 = vmatprep.mubr.msk.f32.mxu1 %vm1363_vm2, %v1356_v18 }
 0x199   :  { %2278 = vmatmul.mubr.msk.f32.gmra.mxu1 %vm1363_vm2, %v1357_v60 }
 0x19a   :  { %2280 = vmatprep.mubr.msk.f32.mxu1 %vm1363_vm2, %v1358_v22 }
 0x19d   :  { %2281 = vmatmul.mubr.msk.f32.gmra.mxu1 %vm1363_vm2, %v1359_v58 }
 0x19e   :  { %2283 = vmatprep.mubr.msk.f32.mxu1 %vm1363_vm2, %v1360_v23 }
 0x1a1   :  { %2284 = vmatmul.mubr.msk.f32.gmra.mxu1 %vm1363_vm2, %v1361_v59 }
 0x22d   :  { %v2240_v6 = vpop.f32.mrf.mxu0 }
 0x22e   :  { %v1996_v15 = vmul.f32 -1.442695, %v2240_v6 }
 0x22f   :  { %v1530_v19 = vpop.f32.mrf.mxu0 }
 0x230   :  { %2295 = vpow2.f32 %v1996_v15  ;;  %v1995_v24 = vmul.f32 -1.442695, %v1530_v19 }
 0x231   :  { %v2243_v25 = vpop.f32.mrf.mxu0 }
 0x232   :  { %2297 = vpow2.f32 %v1995_v24  ;;  %v1998_v4 = vmul.f32 -1.442695, %v2243_v25 }
 0x233   :  { %v1540_v1 = vpop.f32.mrf.mxu0 }
 0x234   :  { %2299 = vpow2.f32 %v1998_v4  ;;  %v1997_v10 = vmul.f32 -1.442695, %v1540_v1 }
 0x235   :  { %v2246_v7 = vpop.f32.mrf.mxu0 }
 0x236   :  { %2301 = vpow2.f32 %v1997_v10  ;;  %v2000_v28 = vmul.f32 -1.442695, %v2246_v7 }
 0x237   :  { %v1550_v30 = vpop.f32.mrf.mxu0 }
 0x238   :  { %2303 = vpow2.f32 %v2000_v28  ;;  %v1999_v31 = vmul.f32 -1.442695, %v1550_v30 }
 0x239   :  { %v2249_v5 = vpop.f32.mrf.mxu0 }
 0x23a   :  { %2305 = vpow2.f32 %v1999_v31  ;;  %v2002_v32 = vmul.f32 -1.442695, %v2249_v5 }
 0x23b   :  { %v1560_v26 = vpop.f32.mrf.mxu0 }
 0x23c   :  { %2307 = vpow2.f32 %v2002_v32  ;;  %v2001_v0 = vmul.f32 -1.442695, %v1560_v26 }
 0x23d   :  { %v2296_v29 = vpop.eup %2295  ;;  %v2252_v33 = vpop.f32.mrf.mxu0 }
 0x23e   :  { %v1786_v38 = vadd.f32 1.0, %v2296_v29  ;;  %2309 = vpow2.f32 %v2001_v0  ;;  %v2004_v39 = vmul.f32 -1.442695, %v2252_v33 }
 0x23f   :  { %v2298_v27 = vpop.eup %2297  ;;  %v1570_v40 = vpop.f32.mrf.mxu0 }
 0x240   :  { %2311 = vrcp.f32 %v1786_v38  ;;  %v1785_v41 = vadd.f32 1.0, %v2298_v27  ;;  %v2003_v36 = vmul.f32 -1.442695, %v1570_v40 }
 0x241   :  { %v2300_v46 = vpop.eup %2299  ;;  %2313 = vpow2.f32 %v2004_v39  ;;  %v2255_v47 = vpop.f32.mrf.mxu0 }
 0x242   :  { %2315 = vrcp.f32 %v1785_v41  ;;  %v1788_v48 = vadd.f32 1.0, %v2300_v46  ;;  %v2006_v13 = vmul.f32 -1.442695, %v2255_v47 }
 0x243   :  { %v2302_v8 = vpop.eup %2301  ;;  %2317 = vpow2.f32 %v2003_v36  ;;  %v1580_v44 = vpop.f32.mrf.mxu0 }
 0x244   :  { %2319 = vrcp.f32 %v1788_v48  ;;  %v1787_v34 = vadd.f32 1.0, %v2302_v8  ;;  %v2005_v42 = vmul.f32 -1.442695, %v1580_v44 }
 0x245   :  { %v2304_v49 = vpop.eup %2303  ;;  %v2264_v45 = vpop.f32.mrf.mxu1  ;;  %2321 = vpow2.f32 %v2006_v13 }
 0x246   :  { %2323 = vrcp.f32 %v1787_v34  ;;  %v1790_v37 = vadd.f32 1.0, %v2304_v49  ;;  %v2012_v54 = vmul.f32 -1.442695, %v2264_v45  ;;  %v2258_v62 = vpop.f32.mrf.mxu0 }
 0x247   :  { %v2306_v55 = vpop.eup %2305  ;;  %v1610_v14 = vpop.f32.mrf.mxu1  ;;  %2325 = vpow2.f32 %v2005_v42  ;;  %v2008_v3 = vmul.f32 -1.442695, %v2258_v62 }
 0x248   :  { %2327 = vrcp.f32 %v1790_v37  ;;  %v1789_v35 = vadd.f32 1.0, %v2306_v55  ;;  %v2011_v43 = vmul.f32 -1.442695, %v1610_v14  ;;  %v1590_v12 = vpop.f32.mrf.mxu0 }
 0x249   :  { %v2308_v56 = vpop.eup %2307  ;;  %2329 = vpow2.f32 %v2012_v54  ;;  %v2267_v57 = vpop.f32.mrf.mxu1  ;;  %v2007_v21 = vmul.f32 -1.442695, %v1590_v12 }
 0x24a   :  { %2331 = vrcp.f32 %v1789_v35  ;;  %v1792_v52 = vadd.f32 1.0, %v2308_v56  ;;  %v2014_v63 = vmul.f32 -1.442695, %v2267_v57  ;;  %v2261_v23 = vpop.f32.mrf.mxu0 }
 0x24b   :  { %v2310_v9 = vpop.eup %2309  ;;  %2333 = vpow2.f32 %v2011_v43  ;;  %v1620_v2 = vpop.f32.mrf.mxu1  ;;  %v2010_v1 = vmul.f32 -1.442695, %v2261_v23 }
 0x24c   :  { %2335 = vrcp.f32 %v1792_v52  ;;  %v1791_v20 = vadd.f32 1.0, %v2310_v9  ;;  %v2013_v50 = vmul.f32 -1.442695, %v1620_v2  ;;  %v1600_v28 = vpop.f32.mrf.mxu0 }
 0x24d   :  { %v2312_v11 = vpop.eup %2311  ;;  %2337 = vpow2.f32 %v2014_v63  ;;  %v2270_v53 = vpop.f32.mrf.mxu1  ;;  %v2009_v33 = vmul.f32 -1.442695, %v1600_v28 }
 0x24e   :  { %v2314_v18 = vpop.eup %2313  ;;  %1883 = vst.msk [vmem:[#allocation2 + $0x8] sm:$0xff] %vm1881_vm3, %v2312_v11  ;;  %2339 = vrcp.f32 %v1791_v20  ;;  %v2016_v51 = vmul.f32 -1.442695, %v2270_v53 }
 0x24f   :  { %v2316_v16 = vpop.eup %2315  ;;  %v1794_v60 = vadd.f32 1.0, %v2314_v18  ;;  %2341 = vpow2.f32 %v2013_v50  ;;  %v1630_v17 = vpop.f32.mrf.mxu1 }
 0x250   :  { %v2318_v22 = vpop.eup %2317  ;;  %1882 = vst.msk [vmem:[#allocation2] sm:$0xff] %vm1881_vm3, %v2316_v16  ;;  %2343 = vpow2.f32 %v2008_v3  ;;  %v2015_v15 = vmul.f32 -1.442695, %v1630_v17 }
 0x251   :  { %v2320_v58 = vpop.eup %2319  ;;  %2345 = vrcp.f32 %v1794_v60  ;;  %v1793_v61 = vadd.f32 1.0, %v2318_v22  ;;  %v2273_v59 = vpop.f32.mrf.mxu1 }
 0x252   :  { %v2322_v6 = vpop.eup %2321  ;;  %1885 = vst.msk [vmem:[#allocation2 + $0x18] sm:$0xff] %vm1881_vm3, %v2320_v58  ;;  %2347 = vpow2.f32 %v2016_v51  ;;  %v2018_v5 = vmul.f32 -1.442695, %v2273_v59 }
 0x253   :  { %v2324_v19 = vpop.eup %2323  ;;  %2349 = vrcp.f32 %v1793_v61  ;;  %v1796_v24 = vadd.f32 1.0, %v2322_v6  ;;  %v1640_v25 = vpop.f32.mrf.mxu1 }
 0x254   :  { %v2326_v4 = vpop.eup %2325  ;;  %1884 = vst.msk [vmem:[#allocation2 + $0x10] sm:$0xff] %vm1881_vm3, %v2324_v19  ;;  %2351 = vpow2.f32 %v2007_v21  ;;  %v2017_v41 = vmul.f32 -1.442695, %v1640_v25 }
 0x255   :  { %v2328_v10 = vpop.eup %2327  ;;  %2353 = vrcp.f32 %v1796_v24  ;;  %v1795_v7 = vadd.f32 1.0, %v2326_v4  ;;  %v2276_v30 = vpop.f32.mrf.mxu1 }
 0x256   :  { %v2330_v31 = vpop.eup %2329  ;;  %1887 = vst.msk [vmem:[#allocation2 + $0x28] sm:$0xff] %vm1881_vm3, %v2328_v10  ;;  %2355 = vpow2.f32 %v2015_v15  ;;  %v2020_v44 = vmul.f32 -1.442695, %v2276_v30 }
 0x257   :  { %v2332_v32 = vpop.eup %2331  ;;  %v1802_v26 = vadd.f32 1.0, %v2330_v31  ;;  %2357 = vrcp.f32 %v1795_v7  ;;  %v1650_v0 = vpop.f32.mrf.mxu1 }
 0x258   :  { %v2334_v29 = vpop.eup %2333  ;;  %1886 = vst.msk [vmem:[#allocation2 + $0x20] sm:$0xff] %vm1881_vm3, %v2332_v32  ;;  %2359 = vpow2.f32 %v2010_v1  ;;  %v2019_v37 = vmul.f32 -1.442695, %v1650_v0 }
 0x259   :  { %v2336_v38 = vpop.eup %2335  ;;  %2361 = vrcp.f32 %v1802_v26  ;;  %v1801_v39 = vadd.f32 1.0, %v2334_v29  ;;  %v2279_v27 = vpop.f32.mrf.mxu1 }
 0x25a   :  { %v2338_v40 = vpop.eup %2337  ;;  %1889 = vst.msk [vmem:[#allocation2 + $0x38] sm:$0xff] %vm1881_vm3, %v2336_v38  ;;  %2363 = vpow2.f32 %v2018_v5  ;;  %v2022_v43 = vmul.f32 -1.442695, %v2279_v27 }
 0x25b   :  { %v2340_v36 = vpop.eup %2339  ;;  %2365 = vrcp.f32 %v1801_v39  ;;  %v1804_v46 = vadd.f32 1.0, %v2338_v40  ;;  %v1660_v47 = vpop.f32.mrf.mxu1 }
 0x25c   :  { %v2342_v48 = vpop.eup %2341  ;;  %1888 = vst.msk [vmem:[#allocation2 + $0x30] sm:$0xff] %vm1881_vm3, %v2340_v36  ;;  %2367 = vpow2.f32 %v2009_v33  ;;  %v2021_v52 = vmul.f32 -1.442695, %v1660_v47 }
 0x25d   :  { %v2344_v13 = vpop.eup %2343  ;;  %2369 = vrcp.f32 %v1804_v46  ;;  %v1803_v8 = vadd.f32 1.0, %v2342_v48  ;;  %v2282_v34 = vpop.f32.mrf.mxu1 }
 0x25e   :  { %v2346_v42 = vpop.eup %2345  ;;  %v1798_v49 = vadd.f32 1.0, %v2344_v13  ;;  %2371 = vpow2.f32 %v2017_v41  ;;  %v2024_v50 = vmul.f32 -1.442695, %v2282_v34 }
 0x25f   :  { %v2348_v45 = vpop.eup %2347  ;;  %1891 = vst.msk [vmem:[#allocation2 + $0x48] sm:$0xff] %vm1881_vm3, %v2346_v42  ;;  %2373 = vrcp.f32 %v1803_v8  ;;  %v1670_v14 = vpop.f32.mrf.mxu1 }
 0x260   :  { %v2350_v54 = vpop.eup %2349  ;;  %2375 = vrcp.f32 %v1798_v49  ;;  %v1806_v55 = vadd.f32 1.0, %v2348_v45  ;;  %v2023_v12 = vmul.f32 -1.442695, %v1670_v14 }
 0x261   :  { %v2352_v35 = vpop.eup %2351  ;;  %1890 = vst.msk [vmem:[#allocation2 + $0x40] sm:$0xff] %vm1881_vm3, %v2350_v54  ;;  %2377 = vpow2.f32 %v2020_v44  ;;  %v2285_v2 = vpop.f32.mrf.mxu1 }
 0x262   :  { %v2354_v56 = vpop.eup %2353  ;;  %2379 = vrcp.f32 %v1806_v55  ;;  %v1797_v57 = vadd.f32 1.0, %v2352_v35  ;;  %v2026_v17 = vmul.f32 -1.442695, %v2285_v2 }
 0x263   :  { %v2356_v62 = vpop.eup %2355  ;;  %1893 = vst.msk [vmem:[#allocation2 + $0x58] sm:$0xff] %vm1881_vm3, %v2354_v56  ;;  %2381 = vpow2.f32 %v2019_v37  ;;  %v1680_v16 = vpop.f32.mrf.mxu1 }
 0x264   :  { %v2358_v63 = vpop.eup %2357  ;;  %2383 = vrcp.f32 %v1797_v57  ;;  %v1805_v9 = vadd.f32 1.0, %v2356_v62  ;;  %v2025_v61 = vmul.f32 -1.442695, %v1680_v16 }
 0x265   :  { %v2360_v20 = vpop.eup %2359  ;;  %1892 = vst.msk [vmem:[#allocation2 + $0x50] sm:$0xff] %vm1881_vm3, %v2358_v63  ;;  %2385 = vpow2.f32 %v2022_v43 }
 0x266   :  { %v2362_v3 = vpop.eup %2361  ;;  %2387 = vrcp.f32 %v1805_v9  ;;  %v1800_v11 = vadd.f32 1.0, %v2360_v20 }
 0x267   :  { %v2364_v53 = vpop.eup %2363  ;;  %1899 = vst.msk [vmem:[#allocation2 + $0x88] sm:$0xff] %vm1881_vm3, %v2362_v3  ;;  %2389 = vpow2.f32 %v2021_v52 }
 0x268   :  { %v2366_v18 = vpop.eup %2365  ;;  %2391 = vrcp.f32 %v1800_v11  ;;  %v1808_v51 = vadd.f32 1.0, %v2364_v53 }
 0x269   :  { %v2368_v60 = vpop.eup %2367  ;;  %1898 = vst.msk [vmem:[#allocation2 + $0x80] sm:$0xff] %vm1881_vm3, %v2366_v18  ;;  %2393 = vpow2.f32 %v2024_v50 }
 0x26a   :  { %v2370_v22 = vpop.eup %2369  ;;  %2395 = vrcp.f32 %v1808_v51  ;;  %v1799_v21 = vadd.f32 1.0, %v2368_v60 }
 0x26b   :  { %v2372_v58 = vpop.eup %2371  ;;  %1901 = vst.msk [vmem:[#allocation2 + $0x98] sm:$0xff] %vm1881_vm3, %v2370_v22  ;;  %2397 = vpow2.f32 %v2023_v12 }
 0x26c   :  { %v2374_v23 = vpop.eup %2373  ;;  %2399 = vrcp.f32 %v1799_v21  ;;  %v1807_v59 = vadd.f32 1.0, %v2372_v58 }
 0x26d   :  { %v2376_v6 = vpop.eup %2375  ;;  %1900 = vst.msk [vmem:[#allocation2 + $0x90] sm:$0xff] %vm1881_vm3, %v2374_v23  ;;  %2401 = vpow2.f32 %v2026_v17 }
 0x26e   :  { %v2378_v15 = vpop.eup %2377  ;;  %1895 = vst.msk [vmem:[#allocation2 + $0x68] sm:$0xff] %vm1881_vm3, %v2376_v6  ;;  %2403 = vrcp.f32 %v1807_v59 }
 0x26f   :  { %v2380_v19 = vpop.eup %2379  ;;  %v1810_v24 = vadd.f32 1.0, %v2378_v15  ;;  %2405 = vpow2.f32 %v2025_v61 }
 0x270   :  { %v2382_v25 = vpop.eup %2381  ;;  %1903 = vst.msk [vmem:[#allocation2 + $0xa8] sm:$0xff] %vm1881_vm3, %v2380_v19 }
 0x271   :  { %v2384_v4 = vpop.eup %2383  ;;  %2407 = vrcp.f32 %v1810_v24  ;;  %v1809_v1 = vadd.f32 1.0, %v2382_v25 }
 0x272   :  { %v2386_v10 = vpop.eup %2385  ;;  %1894 = vst.msk [vmem:[#allocation2 + $0x60] sm:$0xff] %vm1881_vm3, %v2384_v4 }
 0x273   :  { %v2388_v7 = vpop.eup %2387  ;;  %2409 = vrcp.f32 %v1809_v1  ;;  %v1812_v28 = vadd.f32 1.0, %v2386_v10 }
 0x274   :  { %v2390_v30 = vpop.eup %2389  ;;  %1902 = vst.msk [vmem:[#allocation2 + $0xa0] sm:$0xff] %vm1881_vm3, %v2388_v7 }
 0x275   :  { %v2392_v31 = vpop.eup %2391  ;;  %2411 = vrcp.f32 %v1812_v28  ;;  %v1811_v5 = vadd.f32 1.0, %v2390_v30 }
 0x276   :  { %v2394_v32 = vpop.eup %2393  ;;  %1897 = vst.msk [vmem:[#allocation2 + $0x78] sm:$0xff] %vm1881_vm3, %v2392_v31 }
 0x277   :  { %v2396_v26 = vpop.eup %2395  ;;  %2413 = vrcp.f32 %v1811_v5  ;;  %v1814_v0 = vadd.f32 1.0, %v2394_v32 }
 0x278   :  { %v2398_v29 = vpop.eup %2397  ;;  %1905 = vst.msk [vmem:[#allocation2 + $0xb8] sm:$0xff] %vm1881_vm3, %v2396_v26 }
 0x279   :  { %v2400_v33 = vpop.eup %2399  ;;  %2415 = vrcp.f32 %v1814_v0  ;;  %v1813_v38 = vadd.f32 1.0, %v2398_v29 }
 0x27a   :  { %v2402_v39 = vpop.eup %2401  ;;  %1896 = vst.msk [vmem:[#allocation2 + $0x70] sm:$0xff] %vm1881_vm3, %v2400_v33 }
 0x27b   :  { %v2404_v27 = vpop.eup %2403  ;;  %2417 = vrcp.f32 %v1813_v38  ;;  %v1816_v40 = vadd.f32 1.0, %v2402_v39 }
 0x27c   :  { %v2406_v41 = vpop.eup %2405  ;;  %1904 = vst.msk [vmem:[#allocation2 + $0xb0] sm:$0xff] %vm1881_vm3, %v2404_v27 }
 0x27d   :  { %2419 = vrcp.f32 %v1816_v40  ;;  %v1815_v36 = vadd.f32 1.0, %v2406_v41 }
 0x27e   :  { %v2408_v46 = vpop.eup %2407 }
 0x27f   :  { %1907 = vst.msk [vmem:[#allocation2 + $0xc8] sm:$0xff] %vm1881_vm3, %v2408_v46  ;;  %2421 = vrcp.f32 %v1815_v36 }
 0x280   :  { %v2410_v47 = vpop.eup %2409 }
 0x281   :  { %1906 = vst.msk [vmem:[#allocation2 + $0xc0] sm:$0xff] %vm1881_vm3, %v2410_v47 }
 0x282   :  { %v2412_v48 = vpop.eup %2411 }
 0x283   :  { %1909 = vst.msk [vmem:[#allocation2 + $0xd8] sm:$0xff] %vm1881_vm3, %v2412_v48 }
 0x284   :  { %v2414_v13 = vpop.eup %2413 }
 0x285   :  { %1908 = vst.msk [vmem:[#allocation2 + $0xd0] sm:$0xff] %vm1881_vm3, %v2414_v13 }
 0x286   :  { %v2416_v8 = vpop.eup %2415 }
 0x287   :  { %1911 = vst.msk [vmem:[#allocation2 + $0xe8] sm:$0xff] %vm1881_vm3, %v2416_v8 }
 0x288   :  { %v2418_v44 = vpop.eup %2417 }
 0x289   :  { %1910 = vst.msk [vmem:[#allocation2 + $0xe0] sm:$0xff] %vm1881_vm3, %v2418_v44 }
 0x28a   :  { %v2420_v34 = vpop.eup %2419 }
 0x28b   :  { %1913 = vst.msk [vmem:[#allocation2 + $0xf8] sm:$0xff] %vm1881_vm3, %v2420_v34 }
 0x28c   :  { %v2422_v42 = vpop.eup %2421 }
 0x28d   :  { %1912 = vst.msk [vmem:[#allocation2 + $0xf0] sm:$0xff] %vm1881_vm3, %v2422_v42 }
 0x28e   :  { %2434 = shalt.err (!%p2431_p4)
}
 0x28f   :  { %s2446_s26 = smov 128   ;;  %s2447_s27 = smov 8  }
 0x290   :  { %1925 = dma.vmem_to_hbm [thread:$0]  %s1920_s24, 4096, %s2911_s3, [#allocation3], %s2446_s26, %s2446_s26, %s2447_s27  }
 0x291   :  { %2443 = dma.done.wait [#allocation3], 4096  }
 0x292   :  { %2444 = vsyncadd [#allocation3], 4294963200 }
 0x293   :  { %1929 = vsyncpa [#allocation3], 1 }

</bundles_post_ra>
